<compile_context>
chip_gen: v7x
topology: tpu7x:2x2x1
jax: 0.10.0
libtpu: 0.0.40
codegen_flags: <defaults>
</compile_context>

<pallas_src>
import numpy as np

import jax
import jax.numpy as jnp
from jax.experimental import pallas as pl
from jax.experimental.pallas import tpu as pltpu


# ----------------------------- configuration -------------------------------
BATCH = 8                    # multiple of 8 (sublane)
CAT_COLS = 3                 # len(cat_cols)
NUM_COLS = 5                 # len(num_cols)
NUM_EMBDS = [11, 7, 5]       # vocabulary size per categorical column
EMBEDDING_DIM = 8
HIDDEN_DIM = 32              # hidden_dim  (network uses hidden_dim * 2 = 64)
NUM_LAYERS = 2
OUT_PRICE = 1
OUT_CATEGORY = 4
BN_EPS = 1e-5

TOTAL_EMB = CAT_COLS * EMBEDDING_DIM          # 24
FC_IN = NUM_COLS + TOTAL_EMB                  # 29
H2 = HIDDEN_DIM * 2                           # 64
VOCAB_OFFSETS = [int(x) for x in np.cumsum([0] + NUM_EMBDS[:-1])]   # [0, 11, 18]
VOCAB_TOTAL = sum(NUM_EMBDS)                  # 23  (< H2, fits the one-hot lanes)

# weight-slab slots (each slot is a [H2, H2] tile)
SLOT_EMB = 0                        # block-packed embedding tables
SLOT_W1A = 1                        # fc linear1, embedding-input rows (0:24)
SLOT_W2 = 2                         # fc linear2
SLOT_SHARED = 3                     # shared-layer weights: slots 3 .. 3+L-1
SLOT_H1 = 3 + NUM_LAYERS            # fused head first layer  [wp1 | wc1]
SLOT_H2 = 4 + NUM_LAYERS            # fused head second layer (block diagonal)
NW = 5 + NUM_LAYERS

# vector-slab rows (each row is [H2])
ROW_B1 = 0
ROW_B2 = 1
ROW_BH1 = 2                         # [bp1 | bc1]
ROW_BH2 = 3                         # [bp2, bc2, 0...]
ROW_GAMMA = 4                       # rows 4 .. 4+L-1
ROW_BETA = 4 + NUM_LAYERS           # rows ...
ROW_W1N = 4 + 2 * NUM_LAYERS        # fc linear1 rows for the 5 numeric features
NV_USED = 4 + 2 * NUM_LAYERS + NUM_COLS
NV = ((NV_USED + 7) // 8) * 8       # pad to a full sublane group (16)


# ------------------------------- kernel ------------------------------------
def housing_kernel(cat_ref, num_ref, w_ref, v_ref, out_ref):
    f32 = jnp.float32
    V = v_ref[...]                       # [NV, 64]  biases / BN params / w1-num rows
    cat = cat_ref[...]                   # [B, CAT_COLS] int32
    num = num_ref[...]                   # [B, NUM_COLS] f32
    B = cat.shape[0]

    lane = jax.lax.broadcasted_iota(jnp.int32, (B, H2), 1)

    # ---- embedding lookup as an exact one-hot matmul (replaces XLA gathers) ----
    onehot = jnp.zeros((B, H2), f32)
    for i in range(CAT_COLS):
        onehot = onehot + (lane == (cat[:, i:i + 1] + VOCAB_OFFSETS[i])).astype(f32)
    # cols 0:TOTAL_EMB hold the concatenated embedding rows, rest exactly zero
    emb = jnp.dot(onehot, w_ref[SLOT_EMB], preferred_element_type=f32)       # [B, 64]

    # ---- fc trunk: Linear(29->64) -> ReLU -> Linear(64->64) -> ReLU ----
    h = jnp.dot(emb, w_ref[SLOT_W1A], preferred_element_type=f32) + V[ROW_B1:ROW_B1 + 1, :]
    for j in range(NUM_COLS):            # numeric-feature columns: 5 broadcast FMAs (VPU)
        h = h + num[:, j:j + 1] * V[ROW_W1N + j:ROW_W1N + j + 1, :]
    h = jnp.maximum(h, 0.0)
    h = jnp.dot(h, w_ref[SLOT_W2], preferred_element_type=f32) + V[ROW_B2:ROW_B2 + 1, :]
    h = jnp.maximum(h, 0.0)

    # ---- shared layers: Linear (bias exactly cancelled by BN) -> BN(train) -> ReLU ----
    for l in range(NUM_LAYERS):
        z = jnp.dot(h, w_ref[SLOT_SHARED + l], preferred_element_type=f32)
        mu = jnp.mean(z, axis=0, keepdims=True)
        zc = z - mu
        var = jnp.mean(zc * zc, axis=0, keepdims=True)       # biased variance (train mode)
        zn = zc * jax.lax.rsqrt(var + BN_EPS)
        zn = zn * V[ROW_GAMMA + l:ROW_GAMMA + l + 1, :] + V[ROW_BETA + l:ROW_BETA + l + 1, :]
        h = jnp.maximum(zn, 0.0)

    # ---- fused heads ----
    # cols 0:32 = price-head hidden (no activation), cols 32:64 = category-head hidden (ReLU)
    hh = jnp.dot(h, w_ref[SLOT_H1], preferred_element_type=f32) + V[ROW_BH1:ROW_BH1 + 1, :]
    hh = jnp.where(lane >= HIDDEN_DIM, jnp.maximum(hh, 0.0), hh)
    out = jnp.dot(hh, w_ref[SLOT_H2], preferred_element_type=f32) + V[ROW_BH2:ROW_BH2 + 1, :]
    out_ref[...] = out.astype(out_ref.dtype)


# ------------------------------ parameters ---------------------------------
def init_params(key):
    keys = jax.random.split(key, 32)
    ki = iter(keys)

    def kaiming_uniform(k, fan_in, shape):       # nn.init.kaiming_uniform_(a=0)
        b = float(np.sqrt(6.0 / fan_in))
        return jax.random.uniform(k, shape, jnp.float32, -b, b)

    def default_weight(k, fan_in, shape):        # PyTorch Linear default (a=sqrt(5))
        b = float(1.0 / np.sqrt(fan_in))
        return jax.random.uniform(k, shape, jnp.float32, -b, b)

    def default_bias(k, fan_in, fan_out):
        b = float(1.0 / np.sqrt(fan_in))
        return jax.random.uniform(k, (1, fan_out), jnp.float32, -b, b)

    params = {}
    # embeddings: explicitly kaiming-initialized in the module
    params["emb"] = [
        kaiming_uniform(next(ki), EMBEDDING_DIM, (NUM_EMBDS[i], EMBEDDING_DIM))
        for i in range(CAT_COLS)
    ]
    # weights stored as [in, out] (transposed relative to PyTorch)
    params["fc1"] = (kaiming_uniform(next(ki), FC_IN, (FC_IN, H2)),
                     default_bias(next(ki), FC_IN, H2))
    params["fc2"] = (kaiming_uniform(next(ki), H2, (H2, H2)),
                     default_bias(next(ki), H2, H2))
    params["shared"] = []
    for _ in range(NUM_LAYERS):                  # shared linears keep default init
        w = default_weight(next(ki), H2, (H2, H2))
        b = default_bias(next(ki), H2, H2)
        gamma = jnp.ones((1, H2), jnp.float32)
        beta = jnp.zeros((1, H2), jnp.float32)
        params["shared"].append((w, b, gamma, beta))
    params["price1"] = (kaiming_uniform(next(ki), H2, (H2, HIDDEN_DIM)),
                        default_bias(next(ki), H2, HIDDEN_DIM))
    params["price2"] = (kaiming_uniform(next(ki), HIDDEN_DIM, (HIDDEN_DIM, OUT_PRICE)),
                        default_bias(next(ki), HIDDEN_DIM, OUT_PRICE))
    params["cat1"] = (kaiming_uniform(next(ki), H2, (H2, HIDDEN_DIM)),
                      default_bias(next(ki), H2, HIDDEN_DIM))
    params["cat2"] = (kaiming_uniform(next(ki), HIDDEN_DIM, (HIDDEN_DIM, OUT_CATEGORY)),
                      default_bias(next(ki), HIDDEN_DIM, OUT_CATEGORY))
    return params


def pack_params(p):
    """One-time packing of all parameters into two slabs (done outside jit)."""
    w = np.zeros((NW, H2, H2), np.float32)
    v = np.zeros((NV, H2), np.float32)

    # embedding tables, block layout: rows [offset_i : offset_i+V_i], cols [i*8:(i+1)*8]
    for i in range(CAT_COLS):
        off = VOCAB_OFFSETS[i]
        w[SLOT_EMB, off:off + NUM_EMBDS[i],
          i * EMBEDDING_DIM:(i + 1) * EMBEDDING_DIM] = np.asarray(p["emb"][i])

    w1, b1 = p["fc1"]
    w1 = np.asarray(w1)
    w[SLOT_W1A, :TOTAL_EMB, :] = w1[:TOTAL_EMB, :]            # embedding-input rows
    for j in range(NUM_COLS):                                 # numeric-input rows -> v-slab
        v[ROW_W1N + j, :] = w1[TOTAL_EMB + j, :]
    v[ROW_B1, :] = np.asarray(b1)[0]

    w2, b2 = p["fc2"]
    w[SLOT_W2] = np.asarray(w2)
    v[ROW_B2, :] = np.asarray(b2)[0]

    for l, (ws, bs, gamma, beta) in enumerate(p["shared"]):
        w[SLOT_SHARED + l] = np.asarray(ws)
        # Linear bias bs intentionally dropped: exactly cancelled by BatchNorm mean subtraction.
        v[ROW_GAMMA + l, :] = np.asarray(gamma)[0]
        v[ROW_BETA + l, :] = np.asarray(beta)[0]

    wp1, bp1 = p["price1"]
    wp2, bp2 = p["price2"]
    wc1, bc1 = p["cat1"]
    wc2, bc2 = p["cat2"]
    w[SLOT_H1, :, :HIDDEN_DIM] = np.asarray(wp1)
    w[SLOT_H1, :, HIDDEN_DIM:] = np.asarray(wc1)
    v[ROW_BH1, :HIDDEN_DIM] = np.asarray(bp1)[0]
    v[ROW_BH1, HIDDEN_DIM:] = np.asarray(bc1)[0]
    # block-diagonal second head layer: price output col 0, category output cols 1:5
    w[SLOT_H2, :HIDDEN_DIM, :OUT_PRICE] = np.asarray(wp2)
    w[SLOT_H2, HIDDEN_DIM:, OUT_PRICE:OUT_PRICE + OUT_CATEGORY] = np.asarray(wc2)
    v[ROW_BH2, :OUT_PRICE] = np.asarray(bp2)[0]
    v[ROW_BH2, OUT_PRICE:OUT_PRICE + OUT_CATEGORY] = np.asarray(bc2)[0]

    return jnp.asarray(w), jnp.asarray(v)


# -------------------------------- wrapper -----------------------------------
@jax.jit
def housing_forward(w_slab, v_slab, cat_features, num_features):
    out = pl.pallas_call(
        housing_kernel,
        out_shape=jax.ShapeDtypeStruct((BATCH, H2), jnp.float32),
        in_specs=[
            pl.BlockSpec(memory_space=pltpu.MemorySpace.VMEM),   # cat ids   [B, 3] i32
            pl.BlockSpec(memory_space=pltpu.MemorySpace.VMEM),   # num feats [B, 5] f32
            pl.BlockSpec(memory_space=pltpu.MemorySpace.VMEM),   # weight slab [NW, 64, 64]
            pl.BlockSpec(memory_space=pltpu.MemorySpace.VMEM),   # vector slab [NV, 64]
        ],
        out_specs=pl.BlockSpec(memory_space=pltpu.MemorySpace.VMEM),
    )(cat_features, num_features, w_slab, v_slab)
    out_price = out[:, :OUT_PRICE]
    out_category = out[:, OUT_PRICE:OUT_PRICE + OUT_CATEGORY]
    return out_price, out_category


# ------------------------------ pure-JAX reference ---------------------------
def reference_forward(params, cat_features, num_features):
    embs = [params["emb"][i][cat_features[:, i]] for i in range(CAT_COLS)]
    x = jnp.concatenate(embs + [num_features], axis=1)
    w1, b1 = params["fc1"]
    w2, b2 = params["fc2"]
    h = jax.nn.relu(x @ w1 + b1)
    h = jax.nn.relu(h @ w2 + b2)
    for (w, b, gamma, beta) in params["shared"]:
        z = h @ w + b
        mu = jnp.mean(z, axis=0, keepdims=True)
        var = jnp.mean((z - mu) ** 2, axis=0, keepdims=True)
        h = jax.nn.relu((z - mu) * jax.lax.rsqrt(var + BN_EPS) * gamma + beta)
    wp1, bp1 = params["price1"]
    wp2, bp2 = params["price2"]
    wc1, bc1 = params["cat1"]
    wc2, bc2 = params["cat2"]
    price = (h @ wp1 + bp1) @ wp2 + bp2
    category = jax.nn.relu(h @ wc1 + bc1) @ wc2 + bc2
    return price, category


# --------------------------------- main --------------------------------------
if __name__ == "__main__":
    key = jax.random.PRNGKey(0)
    k_params, k_cat, k_num = jax.random.split(key, 3)

    params = init_params(k_params)
    w_slab, v_slab = pack_params(params)      # one-time packing, outside the jitted forward

    ck = jax.random.split(k_cat, CAT_COLS)
    cat_features = jnp.concatenate(
        [jax.random.randint(ck[i], (BATCH, 1), 0, NUM_EMBDS[i], dtype=jnp.int32)
         for i in range(CAT_COLS)],
        axis=1)                                              # [B, CAT_COLS] int32
    num_features = jax.random.normal(k_num, (BATCH, NUM_COLS), jnp.float32)

    out_price, out_cat = housing_forward(w_slab, v_slab, cat_features, num_features)
    jax.block_until_ready((out_price, out_cat))

    assert out_price.shape == (BATCH, OUT_PRICE)
    assert out_cat.shape == (BATCH, OUT_CATEGORY)
    assert jnp.all(jnp.isfinite(out_price)) and jnp.all(jnp.isfinite(out_cat))

    ref_price, ref_cat = reference_forward(params, cat_features, num_features)
    assert jnp.allclose(out_price, ref_price, rtol=1e-3, atol=1e-3)
    assert jnp.allclose(out_cat, ref_cat, rtol=1e-3, atol=1e-3)

    print("KERNEL_OK")
</pallas_src>

<mosaic_0001>
module attributes {stable_mosaic.version = 11 : i64} {
  func.func @housing_kernel(%arg0: memref<8x3xi32, #tpu.memory_space<vmem>>, %arg1: memref<8x5xf32, #tpu.memory_space<vmem>>, %arg2: memref<7x64x64xf32, #tpu.memory_space<vmem>>, %arg3: memref<16x64xf32, #tpu.memory_space<vmem>>, %arg4: memref<8x64xf32, #tpu.memory_space<vmem>>) attributes {dimension_semantics = [], scalar_prefetch = 0 : i64, scratch_operands = 0 : i64, tpu.core_type = #tpu.core_type<tc>} {
    %c0 = arith.constant 0 : index
    %c0_0 = arith.constant 0 : index
    %0 = vector.load %arg3[%c0, %c0_0] : memref<16x64xf32, #tpu.memory_space<vmem>>, vector<16x64xf32>
    %c0_1 = arith.constant 0 : index
    %c0_2 = arith.constant 0 : index
    %1 = vector.load %arg0[%c0_1, %c0_2] : memref<8x3xi32, #tpu.memory_space<vmem>>, vector<8x3xi32>
    %c0_3 = arith.constant 0 : index
    %c0_4 = arith.constant 0 : index
    %2 = vector.load %arg1[%c0_3, %c0_4] : memref<8x5xf32, #tpu.memory_space<vmem>>, vector<8x5xf32>
    %3 = tpu.iota {dimensions = array<i32: 1>} : vector<8x64xi32>
    %cst = arith.constant 0.000000e+00 : f32
    %4 = vector.broadcast %cst : f32 to vector<8x64xf32>
    %5 = vector.extract_strided_slice %1 {offsets = [0, 0], sizes = [8, 1], strides = [1, 1]} : vector<8x3xi32> to vector<8x1xi32>
    %c0_i32 = arith.constant 0 : i32
    %6 = vector.broadcast %c0_i32 : i32 to vector<8x1xi32>
    %7 = arith.addi %5, %6 : vector<8x1xi32>
    %8 = vector.broadcast %7 : vector<8x1xi32> to vector<8x64xi32>
    %9 = arith.cmpi eq, %3, %8 : vector<8x64xi32>
    %10 = arith.extui %9 : vector<8x64xi1> to vector<8x64xi32>
    %11 = arith.sitofp %10 : vector<8x64xi32> to vector<8x64xf32>
    %12 = arith.addf %4, %11 : vector<8x64xf32>
    %13 = vector.extract_strided_slice %1 {offsets = [0, 1], sizes = [8, 1], strides = [1, 1]} : vector<8x3xi32> to vector<8x1xi32>
    %c11_i32 = arith.constant 11 : i32
    %14 = vector.broadcast %c11_i32 : i32 to vector<8x1xi32>
    %15 = arith.addi %13, %14 : vector<8x1xi32>
    %16 = vector.broadcast %15 : vector<8x1xi32> to vector<8x64xi32>
    %17 = arith.cmpi eq, %3, %16 : vector<8x64xi32>
    %18 = arith.extui %17 : vector<8x64xi1> to vector<8x64xi32>
    %19 = arith.sitofp %18 : vector<8x64xi32> to vector<8x64xf32>
    %20 = arith.addf %12, %19 : vector<8x64xf32>
    %21 = vector.extract_strided_slice %1 {offsets = [0, 2], sizes = [8, 1], strides = [1, 1]} : vector<8x3xi32> to vector<8x1xi32>
    %c18_i32 = arith.constant 18 : i32
    %22 = vector.broadcast %c18_i32 : i32 to vector<8x1xi32>
    %23 = arith.addi %21, %22 : vector<8x1xi32>
    %24 = vector.broadcast %23 : vector<8x1xi32> to vector<8x64xi32>
    %25 = arith.cmpi eq, %3, %24 : vector<8x64xi32>
    %26 = arith.extui %25 : vector<8x64xi1> to vector<8x64xi32>
    %27 = arith.sitofp %26 : vector<8x64xi32> to vector<8x64xf32>
    %28 = arith.addf %20, %27 : vector<8x64xf32>
    %c0_5 = arith.constant 0 : index
    %c0_6 = arith.constant 0 : index
    %c0_7 = arith.constant 0 : index
    %29 = vector.load %arg2[%c0_5, %c0_6, %c0_7] : memref<7x64x64xf32, #tpu.memory_space<vmem>>, vector<1x64x64xf32>
    %30 = vector.shape_cast %29 : vector<1x64x64xf32> to vector<64x64xf32>
    %cst_8 = arith.constant dense<0.000000e+00> : vector<8x64xf32>
    %31 = tpu.matmul %28, %30, %cst_8 {dimension_numbers = #tpu.dot_dimension_numbers<[1], [0], [0], [1], [0, 0, 1, 1], [], []>} : vector<8x64xf32>, vector<64x64xf32>, vector<8x64xf32> -> vector<8x64xf32>
    %c1 = arith.constant 1 : index
    %c0_9 = arith.constant 0 : index
    %c0_10 = arith.constant 0 : index
    %32 = vector.load %arg2[%c1, %c0_9, %c0_10] : memref<7x64x64xf32, #tpu.memory_space<vmem>>, vector<1x64x64xf32>
    %33 = vector.shape_cast %32 : vector<1x64x64xf32> to vector<64x64xf32>
    %cst_11 = arith.constant dense<0.000000e+00> : vector<8x64xf32>
    %34 = tpu.matmul %31, %33, %cst_11 {dimension_numbers = #tpu.dot_dimension_numbers<[1], [0], [0], [1], [0, 0, 1, 1], [], []>} : vector<8x64xf32>, vector<64x64xf32>, vector<8x64xf32> -> vector<8x64xf32>
    %35 = vector.extract_strided_slice %0 {offsets = [0, 0], sizes = [1, 64], strides = [1, 1]} : vector<16x64xf32> to vector<1x64xf32>
    %36 = vector.broadcast %35 : vector<1x64xf32> to vector<8x64xf32>
    %37 = arith.addf %34, %36 : vector<8x64xf32>
    %38 = vector.extract_strided_slice %2 {offsets = [0, 0], sizes = [8, 1], strides = [1, 1]} : vector<8x5xf32> to vector<8x1xf32>
    %39 = vector.extract_strided_slice %0 {offsets = [8, 0], sizes = [1, 64], strides = [1, 1]} : vector<16x64xf32> to vector<1x64xf32>
    %40 = vector.broadcast %38 : vector<8x1xf32> to vector<8x64xf32>
    %41 = vector.broadcast %39 : vector<1x64xf32> to vector<8x64xf32>
    %42 = arith.mulf %40, %41 : vector<8x64xf32>
    %43 = arith.addf %37, %42 : vector<8x64xf32>
    %44 = vector.extract_strided_slice %2 {offsets = [0, 1], sizes = [8, 1], strides = [1, 1]} : vector<8x5xf32> to vector<8x1xf32>
    %45 = vector.extract_strided_slice %0 {offsets = [9, 0], sizes = [1, 64], strides = [1, 1]} : vector<16x64xf32> to vector<1x64xf32>
    %46 = vector.broadcast %44 : vector<8x1xf32> to vector<8x64xf32>
    %47 = vector.broadcast %45 : vector<1x64xf32> to vector<8x64xf32>
    %48 = arith.mulf %46, %47 : vector<8x64xf32>
    %49 = arith.addf %43, %48 : vector<8x64xf32>
    %50 = vector.extract_strided_slice %2 {offsets = [0, 2], sizes = [8, 1], strides = [1, 1]} : vector<8x5xf32> to vector<8x1xf32>
    %51 = vector.extract_strided_slice %0 {offsets = [10, 0], sizes = [1, 64], strides = [1, 1]} : vector<16x64xf32> to vector<1x64xf32>
    %52 = vector.broadcast %50 : vector<8x1xf32> to vector<8x64xf32>
    %53 = vector.broadcast %51 : vector<1x64xf32> to vector<8x64xf32>
    %54 = arith.mulf %52, %53 : vector<8x64xf32>
    %55 = arith.addf %49, %54 : vector<8x64xf32>
    %56 = vector.extract_strided_slice %2 {offsets = [0, 3], sizes = [8, 1], strides = [1, 1]} : vector<8x5xf32> to vector<8x1xf32>
    %57 = vector.extract_strided_slice %0 {offsets = [11, 0], sizes = [1, 64], strides = [1, 1]} : vector<16x64xf32> to vector<1x64xf32>
    %58 = vector.broadcast %56 : vector<8x1xf32> to vector<8x64xf32>
    %59 = vector.broadcast %57 : vector<1x64xf32> to vector<8x64xf32>
    %60 = arith.mulf %58, %59 : vector<8x64xf32>
    %61 = arith.addf %55, %60 : vector<8x64xf32>
    %62 = vector.extract_strided_slice %2 {offsets = [0, 4], sizes = [8, 1], strides = [1, 1]} : vector<8x5xf32> to vector<8x1xf32>
    %63 = vector.extract_strided_slice %0 {offsets = [12, 0], sizes = [1, 64], strides = [1, 1]} : vector<16x64xf32> to vector<1x64xf32>
    %64 = vector.broadcast %62 : vector<8x1xf32> to vector<8x64xf32>
    %65 = vector.broadcast %63 : vector<1x64xf32> to vector<8x64xf32>
    %66 = arith.mulf %64, %65 : vector<8x64xf32>
    %67 = arith.addf %61, %66 : vector<8x64xf32>
    %cst_12 = arith.constant 0.000000e+00 : f32
    %68 = vector.broadcast %cst_12 : f32 to vector<8x64xf32>
    %69 = arith.maximumf %67, %68 : vector<8x64xf32>
    %c2 = arith.constant 2 : index
    %c0_13 = arith.constant 0 : index
    %c0_14 = arith.constant 0 : index
    %70 = vector.load %arg2[%c2, %c0_13, %c0_14] : memref<7x64x64xf32, #tpu.memory_space<vmem>>, vector<1x64x64xf32>
    %71 = vector.shape_cast %70 : vector<1x64x64xf32> to vector<64x64xf32>
    %cst_15 = arith.constant dense<0.000000e+00> : vector<8x64xf32>
    %72 = tpu.matmul %69, %71, %cst_15 {dimension_numbers = #tpu.dot_dimension_numbers<[1], [0], [0], [1], [0, 0, 1, 1], [], []>} : vector<8x64xf32>, vector<64x64xf32>, vector<8x64xf32> -> vector<8x64xf32>
    %73 = vector.extract_strided_slice %0 {offsets = [1, 0], sizes = [1, 64], strides = [1, 1]} : vector<16x64xf32> to vector<1x64xf32>
    %74 = vector.broadcast %73 : vector<1x64xf32> to vector<8x64xf32>
    %75 = arith.addf %72, %74 : vector<8x64xf32>
    %cst_16 = arith.constant 0.000000e+00 : f32
    %76 = vector.broadcast %cst_16 : f32 to vector<8x64xf32>
    %77 = arith.maximumf %75, %76 : vector<8x64xf32>
    %c3 = arith.constant 3 : index
    %c0_17 = arith.constant 0 : index
    %c0_18 = arith.constant 0 : index
    %78 = vector.load %arg2[%c3, %c0_17, %c0_18] : memref<7x64x64xf32, #tpu.memory_space<vmem>>, vector<1x64x64xf32>
    %79 = vector.shape_cast %78 : vector<1x64x64xf32> to vector<64x64xf32>
    %cst_19 = arith.constant dense<0.000000e+00> : vector<8x64xf32>
    %80 = tpu.matmul %77, %79, %cst_19 {dimension_numbers = #tpu.dot_dimension_numbers<[1], [0], [0], [1], [0, 0, 1, 1], [], []>} : vector<8x64xf32>, vector<64x64xf32>, vector<8x64xf32> -> vector<8x64xf32>
    %cst_20 = arith.constant dense<0.000000e+00> : vector<64xf32>
    %81 = vector.multi_reduction <add>, %80, %cst_20 [0] : vector<8x64xf32> to vector<64xf32>
    %82 = vector.shape_cast %81 : vector<64xf32> to vector<1x64xf32>
    %cst_21 = arith.constant 8.000000e+00 : f32
    %83 = vector.broadcast %cst_21 : f32 to vector<1x64xf32>
    %84 = arith.divf %82, %83 : vector<1x64xf32>
    %85 = vector.broadcast %84 : vector<1x64xf32> to vector<8x64xf32>
    %86 = arith.subf %80, %85 : vector<8x64xf32>
    %87 = arith.mulf %86, %86 : vector<8x64xf32>
    %cst_22 = arith.constant dense<0.000000e+00> : vector<64xf32>
    %88 = vector.multi_reduction <add>, %87, %cst_22 [0] : vector<8x64xf32> to vector<64xf32>
    %89 = vector.shape_cast %88 : vector<64xf32> to vector<1x64xf32>
    %cst_23 = arith.constant 8.000000e+00 : f32
    %90 = vector.broadcast %cst_23 : f32 to vector<1x64xf32>
    %91 = arith.divf %89, %90 : vector<1x64xf32>
    %cst_24 = arith.constant 9.99999974E-6 : f32
    %92 = vector.broadcast %cst_24 : f32 to vector<1x64xf32>
    %93 = arith.addf %91, %92 : vector<1x64xf32>
    %94 = math.rsqrt %93 : vector<1x64xf32>
    %95 = vector.broadcast %94 : vector<1x64xf32> to vector<8x64xf32>
    %96 = arith.mulf %86, %95 : vector<8x64xf32>
    %97 = vector.extract_strided_slice %0 {offsets = [4, 0], sizes = [1, 64], strides = [1, 1]} : vector<16x64xf32> to vector<1x64xf32>
    %98 = vector.broadcast %97 : vector<1x64xf32> to vector<8x64xf32>
    %99 = arith.mulf %96, %98 : vector<8x64xf32>
    %100 = vector.extract_strided_slice %0 {offsets = [6, 0], sizes = [1, 64], strides = [1, 1]} : vector<16x64xf32> to vector<1x64xf32>
    %101 = vector.broadcast %100 : vector<1x64xf32> to vector<8x64xf32>
    %102 = arith.addf %99, %101 : vector<8x64xf32>
    %cst_25 = arith.constant 0.000000e+00 : f32
    %103 = vector.broadcast %cst_25 : f32 to vector<8x64xf32>
    %104 = arith.maximumf %102, %103 : vector<8x64xf32>
    %c4 = arith.constant 4 : index
    %c0_26 = arith.constant 0 : index
    %c0_27 = arith.constant 0 : index
    %105 = vector.load %arg2[%c4, %c0_26, %c0_27] : memref<7x64x64xf32, #tpu.memory_space<vmem>>, vector<1x64x64xf32>
    %106 = vector.shape_cast %105 : vector<1x64x64xf32> to vector<64x64xf32>
    %cst_28 = arith.constant dense<0.000000e+00> : vector<8x64xf32>
    %107 = tpu.matmul %104, %106, %cst_28 {dimension_numbers = #tpu.dot_dimension_numbers<[1], [0], [0], [1], [0, 0, 1, 1], [], []>} : vector<8x64xf32>, vector<64x64xf32>, vector<8x64xf32> -> vector<8x64xf32>
    %cst_29 = arith.constant dense<0.000000e+00> : vector<64xf32>
    %108 = vector.multi_reduction <add>, %107, %cst_29 [0] : vector<8x64xf32> to vector<64xf32>
    %109 = vector.shape_cast %108 : vector<64xf32> to vector<1x64xf32>
    %cst_30 = arith.constant 8.000000e+00 : f32
    %110 = vector.broadcast %cst_30 : f32 to vector<1x64xf32>
    %111 = arith.divf %109, %110 : vector<1x64xf32>
    %112 = vector.broadcast %111 : vector<1x64xf32> to vector<8x64xf32>
    %113 = arith.subf %107, %112 : vector<8x64xf32>
    %114 = arith.mulf %113, %113 : vector<8x64xf32>
    %cst_31 = arith.constant dense<0.000000e+00> : vector<64xf32>
    %115 = vector.multi_reduction <add>, %114, %cst_31 [0] : vector<8x64xf32> to vector<64xf32>
    %116 = vector.shape_cast %115 : vector<64xf32> to vector<1x64xf32>
    %cst_32 = arith.constant 8.000000e+00 : f32
    %117 = vector.broadcast %cst_32 : f32 to vector<1x64xf32>
    %118 = arith.divf %116, %117 : vector<1x64xf32>
    %cst_33 = arith.constant 9.99999974E-6 : f32
    %119 = vector.broadcast %cst_33 : f32 to vector<1x64xf32>
    %120 = arith.addf %118, %119 : vector<1x64xf32>
    %121 = math.rsqrt %120 : vector<1x64xf32>
    %122 = vector.broadcast %121 : vector<1x64xf32> to vector<8x64xf32>
    %123 = arith.mulf %113, %122 : vector<8x64xf32>
    %124 = vector.extract_strided_slice %0 {offsets = [5, 0], sizes = [1, 64], strides = [1, 1]} : vector<16x64xf32> to vector<1x64xf32>
    %125 = vector.broadcast %124 : vector<1x64xf32> to vector<8x64xf32>
    %126 = arith.mulf %123, %125 : vector<8x64xf32>
    %127 = vector.extract_strided_slice %0 {offsets = [7, 0], sizes = [1, 64], strides = [1, 1]} : vector<16x64xf32> to vector<1x64xf32>
    %128 = vector.broadcast %127 : vector<1x64xf32> to vector<8x64xf32>
    %129 = arith.addf %126, %128 : vector<8x64xf32>
    %cst_34 = arith.constant 0.000000e+00 : f32
    %130 = vector.broadcast %cst_34 : f32 to vector<8x64xf32>
    %131 = arith.maximumf %129, %130 : vector<8x64xf32>
    %c5 = arith.constant 5 : index
    %c0_35 = arith.constant 0 : index
    %c0_36 = arith.constant 0 : index
    %132 = vector.load %arg2[%c5, %c0_35, %c0_36] : memref<7x64x64xf32, #tpu.memory_space<vmem>>, vector<1x64x64xf32>
    %133 = vector.shape_cast %132 : vector<1x64x64xf32> to vector<64x64xf32>
    %cst_37 = arith.constant dense<0.000000e+00> : vector<8x64xf32>
    %134 = tpu.matmul %131, %133, %cst_37 {dimension_numbers = #tpu.dot_dimension_numbers<[1], [0], [0], [1], [0, 0, 1, 1], [], []>} : vector<8x64xf32>, vector<64x64xf32>, vector<8x64xf32> -> vector<8x64xf32>
    %135 = vector.extract_strided_slice %0 {offsets = [2, 0], sizes = [1, 64], strides = [1, 1]} : vector<16x64xf32> to vector<1x64xf32>
    %136 = vector.broadcast %135 : vector<1x64xf32> to vector<8x64xf32>
    %137 = arith.addf %134, %136 : vector<8x64xf32>
    %c32_i32 = arith.constant 32 : i32
    %138 = vector.broadcast %c32_i32 : i32 to vector<8x64xi32>
    %139 = arith.cmpi sge, %3, %138 : vector<8x64xi32>
    %cst_38 = arith.constant 0.000000e+00 : f32
    %140 = vector.broadcast %cst_38 : f32 to vector<8x64xf32>
    %141 = arith.maximumf %137, %140 : vector<8x64xf32>
    %142 = arith.select %139, %141, %137 : vector<8x64xi1>, vector<8x64xf32>
    %c6 = arith.constant 6 : index
    %c0_39 = arith.constant 0 : index
    %c0_40 = arith.constant 0 : index
    %143 = vector.load %arg2[%c6, %c0_39, %c0_40] : memref<7x64x64xf32, #tpu.memory_space<vmem>>, vector<1x64x64xf32>
    %144 = vector.shape_cast %143 : vector<1x64x64xf32> to vector<64x64xf32>
    %cst_41 = arith.constant dense<0.000000e+00> : vector<8x64xf32>
    %145 = tpu.matmul %142, %144, %cst_41 {dimension_numbers = #tpu.dot_dimension_numbers<[1], [0], [0], [1], [0, 0, 1, 1], [], []>} : vector<8x64xf32>, vector<64x64xf32>, vector<8x64xf32> -> vector<8x64xf32>
    %146 = vector.extract_strided_slice %0 {offsets = [3, 0], sizes = [1, 64], strides = [1, 1]} : vector<16x64xf32> to vector<1x64xf32>
    %147 = vector.broadcast %146 : vector<1x64xf32> to vector<8x64xf32>
    %148 = arith.addf %145, %147 : vector<8x64xf32>
    %c0_42 = arith.constant 0 : index
    %c0_43 = arith.constant 0 : index
    %149 = vector.load %arg4[%c0_42, %c0_43] : memref<8x64xf32, #tpu.memory_space<vmem>>, vector<8x64xf32>
    tpu.vector_store %arg4[%c0_42, %c0_43], %148 {strides = array<i32>} : memref<8x64xf32, #tpu.memory_space<vmem>>, vector<8x64xf32>,
    return
  }
}

</mosaic_0001>

<bundles_post_ra>
// kernel: housing_forward.1
= control target key start
LH: loop header
LB: loop body
LE: loop exit
PB: predicated region body
PF: predicated region fallthrough
CT: control target
= control target key end

     0   :  { %9 = vsyncpa [#allocation3], 0  ;;  %s1322_s0 = inlined_call_operand.vmem [shape: s32[8,3], index: 0, kind: input, shape index: {}]   ;;  %s1323_s1 = inlined_call_operand.vmem [shape: f32[8,5], index: 1, kind: input, shape index: {}]   ;;  %s1324_s2 = inlined_call_operand.hbm [shape: f32[7,64,64], index: 2, kind: input, shape index: {}]   ;;  %s1325_s3 = inlined_call_operand.hbm [shape: f32[16,64], index: 3, kind: input, shape index: {}]   ;;  %s1326_s4 = inlined_call_operand.vmem [shape: f32[8,64], index: 4, kind: output, shape index: {}]  }
   0x1   :  { %10 = vsyncpa [#allocation5], 0  ;;  %s1155_s15 = smov [#allocation2]   ;;  %s1107_s19 = scalar_lea.hbm %s1324_s2, 7168 }
   0x2   :  { %s20_s16 = sshll.u32 %s1155_s15, 4  ;;  %p1108_p0 = scmp.ne.s32.totalorder %s1324_s2, %s1107_s19  ;;  %s21_s16 = int_to_ptr.vmem [resolvable:$true] %s20_s16 }
   0x3   :  { %p1111_p1 = scmp.lt.u32.totalorder %s1107_s19, %s1324_s2 }
   0x5   :  { %p1113_p2 = pnand %p1111_p1, %p1108_p0 }
   0x7   :  { %1116 = shalt.err (!%p1113_p2)
}
   0x8   :  { %s1117_s24 = scalar_lea.vmem %s21_s16, 7168  ;;  %p1122_p4 = scmp.lt.s32.totalorder %s21_s16, %s21_s16 }
   0x9   :  { %p1118_p3 = scmp.ne.s32.totalorder %s21_s16, %s1117_s24  ;;  %p1123_p5 = scmp.lt.s32.totalorder %s1117_s24, %s1117_s24 }
   0xb   :  { %p1124_p6 = por %p1123_p5, %p1122_p4 }
   0xd   :  { %p1125_p7 = pnand %p1124_p6, %p1118_p3 }
   0xf   :  { %1128 = shalt.err (!%p1125_p7)
}
  0x10   :  { %s1156_s25 = smov 128   ;;  %s1157_s26 = smov 8  }
  0x11   :  { %26 = dma.hbm_to_vmem [thread:$0]  %s1324_s2, 7168, %s21_s16, [#allocation3], %s1156_s25, %s1156_s25, %s1157_s26  }
  0x12   :  { %s1158_s29 = smov [#allocation4]   ;;  %s1129_s7 = scalar_lea.hbm %s1325_s3, 256 }
  0x13   :  { %s32_s30 = sshll.u32 %s1158_s29, 4  ;;  %p1130_p8 = scmp.ne.s32.totalorder %s1325_s3, %s1129_s7  ;;  %s33_s30 = int_to_ptr.vmem [resolvable:$true] %s32_s30 }
  0x14   :  { %p1133_p9 = scmp.lt.u32.totalorder %s1129_s7, %s1325_s3 }
  0x16   :  { %p1135_p10 = pnand %p1133_p9, %p1130_p8 }
  0x18   :  { %1138 = shalt.err (!%p1135_p10)
}
  0x19   :  { %s1139_s12 = scalar_lea.vmem %s33_s30, 256  ;;  %p1144_p12 = scmp.lt.s32.totalorder %s33_s30, %s33_s30 }
  0x1a   :  { %p1140_p11 = scmp.ne.s32.totalorder %s33_s30, %s1139_s12  ;;  %p1145_p13 = scmp.lt.s32.totalorder %s1139_s12, %s1139_s12 }
  0x1c   :  { %p1146_p0 = por %p1145_p13, %p1144_p12 }
  0x1e   :  { %p1147_p1 = pnand %p1146_p0, %p1140_p11 }
  0x20   :  { %1150 = shalt.err (!%p1147_p1)
}
  0x21   :  { %38 = dma.hbm_to_vmem [thread:$0]  %s1325_s3, 256, %s33_s30, [#allocation5], %s1156_s25, %s1156_s25, %s1157_s26  }
  0x22   :  { %1151 = dma.done.wait [#allocation3], 7168  }
  0x23   :  { %1152 = vsyncadd [#allocation3], 4294960128 }
  0x24   :  { %1153 = dma.done.wait [#allocation5], 256  }
  0x25   :  { %1154 = vsyncadd [#allocation5], 4294967040  ;;  %v1159_v0 = vmov 0   ;;  %v1160_v1 = vmov 2   ;;  %v1161_v2 = vmov 0.0|0.0   ;;  %v47_v3 = vld [vmem:[%s1322_s0] sm:$0xff]  ;;  %v49_v32 = vlaneseq }
  0x26   :  { %1094 = vset.pattern.permute.xlu0 %v1159_v0  ;;  %1096 = vset.pattern.permute.xlu1 %v1160_v1  ;;  %v74_v4 = vld [vmem:[#allocation2] sm:$0xff]  ;;  %v75_v5 = vld [vmem:[#allocation2 + $0x8] sm:$0xff]  ;;  %v66_v6 = vadd.s32 18, %v47_v3  ;;  %v76_v8 = vld [vmem:[#allocation2 + $0x10] sm:$0xff]  ;;  %v58_v10 = vadd.s32 11, %v47_v3  ;;  %v1162_v14 = vmov 1  }
  0x27   :  { %998 = vmatprep.subr.bf16.mxu0 %v1161_v2  ;;  %1010 = vmatprep.subr.bf16.mxu1 %v1161_v2  ;;  %v999_v7 = vpack.c.bf16 %v75_v5, %v74_v4  ;;  %v77_v9 = vld [vmem:[#allocation2 + $0x18] sm:$0xff]  ;;  %v78_v12 = vld [vmem:[#allocation2 + $0x20] sm:$0xff]  ;;  %v79_v13 = vld [vmem:[#allocation2 + $0x28] sm:$0xff]  ;;  %vm1163_vm0 = vmmov 0   ;;  %v1164_v19 = vmov 0.0   ;;  %v1234_v33 = vand.u32 127, %v49_v32 }
  0x28   :  { %52 = vperm.xlu0 %1094, %v47_v3   ;;  %68 = vperm.xlu1 %1096, %v66_v6   ;;  %v1002_v11 = vpack.c.bf16 %v77_v9, %v76_v8  ;;  %v1005_v15 = vpack.c.bf16 %v79_v13, %v78_v12  ;;  %v80_v16 = vld [vmem:[#allocation2 + $0x30] sm:$0xff]  ;;  %v81_v17 = vld [vmem:[#allocation2 + $0x38] sm:$0xff]  ;;  %v157_v20 = vld [vmem:[#allocation2 + $0x40] sm:$0xff]  ;;  %vm82_vm4 = vcmask 523264   ;;  %v1165_v43 = vmov 4  }
  0x29   :  { %1000 = vmatpush3.bf16.msra.mxu0 %v999_v7  ;;  %v1008_v18 = vpack.c.bf16 %v81_v17, %v80_v16  ;;  %881 = vmatprep.mubr.msk.f32.mxu0 %vm1163_vm0, %v1164_v19  ;;  %v158_v21 = vld [vmem:[#allocation2 + $0x48] sm:$0xff]  ;;  %v159_v22 = vld [vmem:[#allocation2 + $0x50] sm:$0xff]  ;;  %v160_v24 = vld [vmem:[#allocation2 + $0x58] sm:$0xff]  ;;  %v1166_v44 = vmov 3   ;;  %v1259_v6 = vshrl.u32 %v49_v32, 7  ;;  %vm696_vm5 = vcmp.ge.s32.totalorder %v1234_v33, 32 }
  0x2a   :  { %1001 = vmatprep.subr.bf16.mxu0 %v1161_v2  ;;  %900 = vmatprep.mubr.msk.f32.mxu1 %vm1163_vm0, %v1164_v19  ;;  %v1011_v23 = vpack.c.bf16 %v158_v21, %v157_v20  ;;  %v1014_v25 = vpack.c.bf16 %v160_v24, %v159_v22  ;;  %v161_v26 = vld [vmem:[#allocation2 + $0x60] sm:$0xff]  ;;  %v162_v27 = vld [vmem:[#allocation2 + $0x68] sm:$0xff]  ;;  %v163_v29 = vld [vmem:[#allocation2 + $0x70] sm:$0xff] }
  0x2b   :  { %v1017_v28 = vpack.c.bf16 %v162_v27, %v161_v26  ;;  %v164_v30 = vld [vmem:[#allocation2 + $0x78] sm:$0xff]  ;;  %v48_v42 = vld [vmem:[%s1323_s1] sm:$0xff]  ;;  %v296_v48 = vld [vmem:[#allocation2 + $0x88] sm:$0xff]  ;;  %v167_v8 = vsub.s32 0, %v1259_v6  ;;  %v269_v12 = vsub.s32 2, %v1259_v6  ;;  %v279_v17 = vsub.s32 3, %v1259_v6 }
  0x2c   :  { %1095 = vset.pattern.permute.xlu0 %v1162_v14  ;;  %1097 = vset.pattern.permute.xlu1 %v1159_v0  ;;  %v1020_v31 = vpack.c.bf16 %v164_v30, %v163_v29  ;;  %v295_v47 = vld [vmem:[#allocation2 + $0x80] sm:$0xff]  ;;  %v297_v50 = vld [vmem:[#allocation2 + $0x90] sm:$0xff]  ;;  %v298_v51 = vld [vmem:[#allocation2 + $0x98] sm:$0xff]  ;;  %v289_v20 = vsub.s32 4, %v1259_v6 }
  0x2d   :  { %60 = vperm.xlu0 %1095, %v58_v10   ;;  %1003 = vmatpush3.bf16.msra.mxu0 %v1002_v11  ;;  %v1023_v49 = vpack.c.bf16 %v296_v48, %v295_v47  ;;  %v1026_v52 = vpack.c.bf16 %v298_v51, %v297_v50  ;;  %v299_v53 = vld [vmem:[#allocation2 + $0xa0] sm:$0xff]  ;;  %v300_v54 = vld [vmem:[#allocation2 + $0xa8] sm:$0xff]  ;;  %v301_v56 = vld [vmem:[#allocation2 + $0xb0] sm:$0xff]  ;;  %v259_v10 = vsub.s32 1, %v1259_v6 }
  0x2e   :  { %1004 = vmatprep.subr.bf16.mxu0 %v1161_v2  ;;  %1012 = vmatpush3.bf16.msra.mxu1 %v1011_v23  ;;  %v1029_v55 = vpack.c.bf16 %v300_v54, %v299_v53  ;;  %v302_v57 = vld [vmem:[#allocation2 + $0xb8] sm:$0xff]  ;;  %v382_v59 = vld [vmem:[#allocation2 + $0xc0] sm:$0xff]  ;;  %v383_v60 = vld [vmem:[#allocation2 + $0xc8] sm:$0xff] }
  0x2f   :  { %1013 = vmatprep.subr.bf16.mxu1 %v1161_v2  ;;  %244 = vperm.xlu1 %1097, %v48_v42   ;;  %v1032_v58 = vpack.c.bf16 %v302_v57, %v301_v56  ;;  %v384_v61 = vld [vmem:[#allocation2 + $0xd0] sm:$0xff]  ;;  %v1035_v62 = vpack.c.bf16 %v383_v60, %v382_v59  ;;  %v385_v63 = vld [vmem:[#allocation2 + $0xd8] sm:$0xff]  ;;  %v387_v3 = vld [vmem:[#allocation2 + $0xe8] sm:$0xff] }
  0x30   :  { %v1038_v0 = vpack.c.bf16 %v385_v63, %v384_v61  ;;  %v46_v9 = vld [vmem:[#allocation4 + $0x8] sm:$0xff]  ;;  %v1263_v11 = vld [vmem:[#allocation4] sm:$0xff]  ;;  %v499_v51 = vld [vmem:[#allocation2 + $0x110] sm:$0xff] }
  0x31   :  { %1099 = vset.pattern.permute.xlu0 %v1160_v1  ;;  %1006 = vmatpush3.bf16.msra.mxu0 %v1005_v15  ;;  %v386_v1 = vld [vmem:[#allocation2 + $0xe0] sm:$0xff]  ;;  %v250_v13 = vrot.slane %v46_v9, %v167_v8  ;;  %v260_v15 = vrot.slane %v46_v9, %v259_v10  ;;  %v290_v30 = vrot.slane %v46_v9, %v289_v20  ;;  %v503_v57 = vld [vmem:[#allocation2 + $0x130] sm:$0xff] }
  0x32   :  { %1007 = vmatprep.subr.bf16.mxu0 %v1161_v2  ;;  %1015 = vmatpush3.bf16.msra.mxu1 %v1014_v25  ;;  %v1041_v4 = vpack.c.bf16 %v387_v3, %v386_v1  ;;  %v497_v48 = vld [vmem:[#allocation2 + $0x100] sm:$0xff] }
  0x33   :  { %1016 = vmatprep.subr.bf16.mxu1 %v1161_v2  ;;  %264 = vperm.xlu0 %1099, %v48_v42   ;;  %v501_v54 = vld [vmem:[#allocation2 + $0x120] sm:$0xff] }
  0x34   :  { %1098 = vset.pattern.permute.xlu1 %v1162_v14  ;;  %v168_v14 = vrot.slane %v1263_v11, %v167_v8 }
  0x35   :  { %1009 = vmatpush3.bf16.msra.mxu0 %v1008_v18  ;;  %254 = vperm.xlu1 %1098, %v48_v42   ;;  %v270_v18 = vrot.slane %v46_v9, %v269_v12 }
  0x36   :  { %1022 = vmatprep.subr.bf16.mxu0 %v1161_v2  ;;  %1018 = vmatpush3.bf16.msra.mxu1 %v1017_v28  ;;  %v280_v28 = vrot.slane %v46_v9, %v279_v17 }
  0x37   :  { %1019 = vmatprep.subr.bf16.mxu1 %v1161_v2  ;;  %1102 = vset.pattern.permute.xlu0 %v1165_v43 }
  0x39   :  { %1100 = vset.pattern.permute.xlu1 %v1166_v44 }
  0x3a   :  { %1021 = vmatpush3.bf16.msra.mxu1 %v1020_v31  ;;  %274 = vperm.xlu1 %1100, %v48_v42  }
  0x3b   :  { %1034 = vmatprep.subr.bf16.mxu1 %v1161_v2 }
  0x3e   :  { %1101 = vset.pattern.permute.xlu1 %v1165_v43  ;;  %v306_v43 = vrot.slane %v1263_v11, %v259_v10 }
  0x3f   :  { %284 = vperm.xlu1 %1101, %v48_v42  }
  0xa7   :  { %v53_v34 = vpop.permute.xlu0 %52  ;;  %v69_v35 = vpop.permute.xlu1 %68 }
  0xa8   :  { %vm54_vm1 = vcmp.eq.s32.totalorder %v1234_v33, %v53_v34  ;;  %vm70_vm2 = vcmp.eq.s32.totalorder %v1234_v33, %v69_v35 }
  0xa9   :  { %v792_v37 = vsel %vm54_vm1, 1.0, %v1164_v19  ;;  %v794_v39 = vsel %vm70_vm2, 1.0, %v1164_v19 }
  0xac   :  { %v61_v36 = vpop.permute.xlu0 %60 }
  0xad   :  { %vm62_vm3 = vcmp.eq.s32.totalorder %v1234_v33, %v61_v36 }
  0xae   :  { %v793_v38 = vsel %vm62_vm3, 1.0, %v1164_v19  ;;  %v245_v5 = vpop.permute.xlu1 %244 }
  0xaf   :  { %v65_v40 = vadd.f32 %v793_v38, %v792_v37  ;;  %v251_v23 = vmul.f32 %v250_v13, %v245_v5 }
  0xb1   :  { %v73_v41 = vadd.f32 %v794_v39, %v65_v40  ;;  %v388_v40 = vld [vmem:[#allocation2 + $0xf0] sm:$0xff] }
  0xb2   :  { %v265_v22 = vpop.permute.xlu0 %264 }
  0xb3   :  { %882 = vmatmul.mubr.msk.f32.vlgmr.msra.gmra.mrb[0].mxu0 %vm82_vm4, %v73_v41  ;;  %v271_v29 = vmul.f32 %v270_v18, %v265_v22  ;;  %v389_v41 = vld [vmem:[#allocation2 + $0xf8] sm:$0xff] }
  0xb4   :  { %919 = vmatprep.mubr.msk.f32.mxu0 %vm1163_vm0, %v1164_v19  ;;  %1024 = vmatpush3.bf16.msra.mxu0 %v1023_v49  ;;  %v255_v7 = vpop.permute.xlu1 %254  ;;  %v1044_v42 = vpack.c.bf16 %v389_v41, %v388_v40  ;;  %v498_v49 = vld [vmem:[#allocation2 + $0x108] sm:$0xff]  ;;  %v617_v41 = vld [vmem:[#allocation2 + $0x170] sm:$0xff] }
  0xb5   :  { %1025 = vmatprep.subr.bf16.mxu0 %v1161_v2  ;;  %v261_v26 = vmul.f32 %v260_v15, %v255_v7  ;;  %v1047_v50 = vpack.c.bf16 %v498_v49, %v497_v48  ;;  %v704_v49 = vld [vmem:[#allocation2 + $0x1a0] sm:$0xff] }
  0xb8   :  { %1027 = vmatpush3.bf16.msra.mxu0 %v1026_v52  ;;  %v500_v52 = vld [vmem:[#allocation2 + $0x118] sm:$0xff] }
  0xb9   :  { %1028 = vmatprep.subr.bf16.mxu0 %v1161_v2  ;;  %v275_v16 = vpop.permute.xlu1 %274  ;;  %v1050_v53 = vpack.c.bf16 %v500_v52, %v499_v51 }
  0xba   :  { %v281_v34 = vmul.f32 %v280_v28, %v275_v16 }
  0xbc   :  { %1030 = vmatpush3.bf16.msra.mxu0 %v1029_v55  ;;  %v502_v55 = vld [vmem:[#allocation2 + $0x128] sm:$0xff] }
  0xbd   :  { %1031 = vmatprep.subr.bf16.mxu0 %v1161_v2  ;;  %v1053_v56 = vpack.c.bf16 %v502_v55, %v501_v54 }
  0xbe   :  { %v285_v31 = vpop.permute.xlu1 %284 }
  0xbf   :  { %v291_v36 = vmul.f32 %v290_v30, %v285_v31 }
  0xc0   :  { %1033 = vmatpush3.bf16.msra.mxu0 %v1032_v58  ;;  %v504_v58 = vld [vmem:[#allocation2 + $0x138] sm:$0xff] }
  0xc1   :  { %1046 = vmatprep.subr.bf16.mxu0 %v1161_v2  ;;  %v1056_v59 = vpack.c.bf16 %v504_v58, %v503_v57 }
 0x186   :  { %v152_v45 = vpop.f32.mrb[0].mxu0 }
 0x187   :  { %v883_v46 = vpop.f32.mrb[1].mxu0  ;;  %901 = vmatmul.mubr.msk.f32.vlgmr.msra.gmra.mrb[0].mxu1 %vm82_vm4, %v152_v45 }
 0x188   :  { %938 = vmatprep.mubr.msk.f32.mxu1 %vm1163_vm0, %v1164_v19  ;;  %1036 = vmatpush3.bf16.msra.mxu1 %v1035_v62 }
 0x189   :  { %1037 = vmatprep.subr.bf16.mxu1 %v1161_v2 }
 0x18c   :  { %1039 = vmatpush3.bf16.msra.mxu1 %v1038_v0 }
 0x18d   :  { %1040 = vmatprep.subr.bf16.mxu1 %v1161_v2 }
 0x190   :  { %1042 = vmatpush3.bf16.msra.mxu1 %v1041_v4 }
 0x191   :  { %1043 = vmatprep.subr.bf16.mxu1 %v1161_v2 }
 0x194   :  { %1045 = vmatpush3.bf16.msra.mxu1 %v1044_v42 }
 0x195   :  { %1058 = vmatprep.subr.bf16.mxu1 %v1161_v2 }
 0x25a   :  { %v238_v21 = vpop.f32.mrb[0].mxu1 }
 0x25b   :  { %v239_v24 = vadd.f32 %v238_v21, %v168_v14  ;;  %v902_v25 = vpop.f32.mrb[1].mxu1 }
 0x25c   :  { %v488_v25 = vrot.slane %v1263_v11, %v289_v20  ;;  %v614_v20 = vld [vmem:[#allocation2 + $0x158] sm:$0xff] }
 0x25d   :  { %v252_v27 = vadd.f32 %v251_v23, %v239_v24  ;;  %v492_v24 = vsub.s32 6, %v1259_v6 }
 0x25f   :  { %v262_v32 = vadd.f32 %v261_v26, %v252_v27  ;;  %v493_v28 = vrot.slane %v1263_v11, %v492_v24  ;;  %v706_v24 = vld [vmem:[#allocation2 + $0x1b0] sm:$0xff] }
 0x261   :  { %v272_v35 = vadd.f32 %v271_v29, %v262_v32  ;;  %v611_v32 = vld [vmem:[#allocation2 + $0x140] sm:$0xff] }
 0x263   :  { %v282_v37 = vadd.f32 %v281_v34, %v272_v35  ;;  %v612_v34 = vld [vmem:[#allocation2 + $0x148] sm:$0xff] }
 0x264   :  { %v1059_v35 = vpack.c.bf16 %v612_v34, %v611_v32  ;;  %v711_v34 = vrot.slane %v1263_v11, %v279_v17 }
 0x265   :  { %v292_v38 = vadd.f32 %v291_v36, %v282_v37  ;;  %v613_v36 = vld [vmem:[#allocation2 + $0x150] sm:$0xff] }
 0x266   :  { %v1062_v37 = vpack.c.bf16 %v614_v20, %v613_v36 }
 0x267   :  { %v293_v39 = vmax.f32 %v292_v38, 0.0  ;;  %v615_v38 = vld [vmem:[#allocation2 + $0x160] sm:$0xff] }
 0x269   :  { %920 = vmatmul.mubr.msk.f32.vlgmr.msra.gmra.mrb[2].mxu0 %vm82_vm4, %v293_v39  ;;  %v616_v39 = vld [vmem:[#allocation2 + $0x168] sm:$0xff] }
 0x26a   :  { %957 = vmatprep.mubr.msk.f32.mxu0 %vm1163_vm0, %v1164_v19  ;;  %1048 = vmatpush3.bf16.msra.mxu0 %v1047_v50  ;;  %v1065_v40 = vpack.c.bf16 %v616_v39, %v615_v38  ;;  %v705_v50 = vld [vmem:[#allocation2 + $0x1a8] sm:$0xff] }
 0x26b   :  { %1049 = vmatprep.subr.bf16.mxu0 %v1161_v2  ;;  %v1077_v51 = vpack.c.bf16 %v705_v50, %v704_v49 }
 0x26e   :  { %1051 = vmatpush3.bf16.msra.mxu0 %v1050_v53 }
 0x26f   :  { %1052 = vmatprep.subr.bf16.mxu0 %v1161_v2 }
 0x272   :  { %1054 = vmatpush3.bf16.msra.mxu0 %v1053_v56 }
 0x273   :  { %1055 = vmatprep.subr.bf16.mxu0 %v1161_v2 }
 0x276   :  { %1057 = vmatpush3.bf16.msra.mxu0 %v1056_v59 }
 0x277   :  { %1070 = vmatprep.subr.bf16.mxu0 %v1161_v2 }
 0x33c   :  { %v376_v44 = vpop.f32.mrb[2].mxu0 }
 0x33d   :  { %v377_v45 = vadd.f32 %v376_v44, %v306_v43  ;;  %v921_v46 = vpop.f32.mrb[3].mxu0  ;;  %v700_v43 = vld [vmem:[#allocation2 + $0x180] sm:$0xff]  ;;  %v701_v44 = vld [vmem:[#allocation2 + $0x188] sm:$0xff] }
 0x33e   :  { %v1071_v46 = vpack.c.bf16 %v701_v44, %v700_v43 }
 0x33f   :  { %v380_v47 = vmax.f32 %v377_v45, 0.0  ;;  %v702_v45 = vld [vmem:[#allocation2 + $0x190] sm:$0xff] }
 0x341   :  { %939 = vmatmul.mubr.msk.f32.vlgmr.msra.gmra.mrb[2].mxu1 %vm82_vm4, %v380_v47  ;;  %v703_v47 = vld [vmem:[#allocation2 + $0x198] sm:$0xff] }
 0x342   :  { %976 = vmatprep.mubr.msk.f32.mxu1 %vm1163_vm0, %v1164_v19  ;;  %1060 = vmatpush3.bf16.msra.mxu1 %v1059_v35  ;;  %v1074_v48 = vpack.c.bf16 %v703_v47, %v702_v45 }
 0x343   :  { %1061 = vmatprep.subr.bf16.mxu1 %v1161_v2 }
 0x346   :  { %1063 = vmatpush3.bf16.msra.mxu1 %v1062_v37 }
 0x347   :  { %1064 = vmatprep.subr.bf16.mxu1 %v1161_v2 }
 0x34a   :  { %1066 = vmatpush3.bf16.msra.mxu1 %v1065_v40 }
 0x34b   :  { %1067 = vmatprep.subr.bf16.mxu1 %v1161_v2 }
 0x414   :  { %v459_v60 = vpop.f32.mrb[2].mxu1 }
 0x415   :  { %v463_v61 = vsel %vm82_vm4, %v459_v60, 0.0  ;;  %v940_v62 = vpop.f32.mrb[3].mxu1 }
 0x416   :  { %v464_v63 = vrot.slane %v463_v61, 4 }
 0x418   :  { %v465_v0 = vadd.f32 %v464_v63, %v463_v61 }
 0x41a   :  { %v466_v1 = vrot.slane %v465_v0, 2 }
 0x41c   :  { %v467_v3 = vadd.f32 %v466_v1, %v465_v0 }
 0x41e   :  { %v468_v4 = vrot.slane %v467_v3, 1 }
 0x420   :  { %v469_v5 = vadd.f32 %v468_v4, %v467_v3 }
 0x422   :  { %v471_v7 = vmul.f32 0.125, %v469_v5 }
 0x424   :  { %v472_v8 = vsub.f32 %v459_v60, %v471_v7 }
 0x426   :  { %v473_v9 = vmul.f32 %v472_v8, %v472_v8 }
 0x428   :  { %v474_v10 = vsel %vm82_vm4, %v473_v9, 0.0 }
 0x429   :  { %v475_v13 = vrot.slane %v474_v10, 4 }
 0x42b   :  { %v476_v14 = vadd.f32 %v475_v13, %v474_v10  ;;  %v601_v10 = vsub.s32 5, %v1259_v6  ;;  %v606_v13 = vsub.s32 7, %v1259_v6 }
 0x42d   :  { %v477_v15 = vrot.slane %v476_v14, 2 }
 0x42f   :  { %v478_v16 = vadd.f32 %v477_v15, %v476_v14  ;;  %v602_v14 = vrot.slane %v1263_v11, %v601_v10 }
 0x431   :  { %v479_v18 = vrot.slane %v478_v16, 1 }
 0x433   :  { %v480_v21 = vadd.f32 %v479_v18, %v478_v16  ;;  %v607_v18 = vrot.slane %v1263_v11, %v606_v13 }
 0x435   :  { %v481_v22 = vmul.f32 0.125, %v480_v21 }
 0x437   :  { %v482_v23 = vadd.f32 1e-05, %v481_v22 }
 0x439   :  { %1103 = vrsqrt.f32 %v482_v23 }
 0x443   :  { %v1104_v26 = vpop.eup %1103 }
 0x444   :  { %v484_v27 = vmul.f32 %v1104_v26, %v472_v8 }
 0x446   :  { %v489_v29 = vmul.f32 %v488_v25, %v484_v27  ;;  %v707_v25 = vld [vmem:[#allocation2 + $0x1b8] sm:$0xff]  ;;  %v622_v27 = vrot.slane %v1263_v11, %v269_v12 }
 0x447   :  { %v1080_v26 = vpack.c.bf16 %v707_v25, %v706_v24 }
 0x448   :  { %v494_v30 = vadd.f32 %v493_v28, %v489_v29 }
 0x44a   :  { %v495_v31 = vmax.f32 %v494_v30, 0.0 }
 0x44c   :  { %958 = vmatmul.mubr.msk.f32.vlgmr.msra.gmra.mrb[4].mxu0 %vm82_vm4, %v495_v31 }
 0x44d   :  { %995 = vmatprep.mubr.msk.f32.mxu0 %vm1163_vm0, %v1164_v19  ;;  %v618_v19 = vld [vmem:[#allocation2 + $0x178] sm:$0xff]  ;;  %1072 = vmatpush3.bf16.msra.mxu0 %v1071_v46 }
 0x44e   :  { %v1068_v42 = vpack.c.bf16 %v618_v19, %v617_v41  ;;  %1073 = vmatprep.subr.bf16.mxu0 %v1161_v2 }
 0x450   :  { %1069 = vmatpush3.bf16.msra.mxu1 %v1068_v42 }
 0x451   :  { %1075 = vmatpush3.bf16.msra.mxu0 %v1074_v48 }
 0x452   :  { %1076 = vmatprep.subr.bf16.mxu0 %v1161_v2 }
 0x455   :  { %1078 = vmatpush3.bf16.msra.mxu0 %v1077_v51 }
 0x456   :  { %1079 = vmatprep.subr.bf16.mxu0 %v1161_v2 }
 0x459   :  { %1081 = vmatpush3.bf16.msra.mxu0 %v1080_v26 }
 0x51f   :  { %v574_v52 = vpop.f32.mrb[4].mxu0 }
 0x520   :  { %v578_v53 = vsel %vm82_vm4, %v574_v52, 0.0  ;;  %v959_v54 = vpop.f32.mrb[5].mxu0 }
 0x521   :  { %v579_v55 = vrot.slane %v578_v53, 4 }
 0x523   :  { %v580_v56 = vadd.f32 %v579_v55, %v578_v53 }
 0x525   :  { %v581_v57 = vrot.slane %v580_v56, 2 }
 0x527   :  { %v582_v58 = vadd.f32 %v581_v57, %v580_v56 }
 0x529   :  { %v583_v59 = vrot.slane %v582_v58, 1 }
 0x52b   :  { %v584_v60 = vadd.f32 %v583_v59, %v582_v58 }
 0x52d   :  { %v585_v61 = vmul.f32 0.125, %v584_v60 }
 0x52f   :  { %v586_v62 = vsub.f32 %v574_v52, %v585_v61 }
 0x531   :  { %v587_v63 = vmul.f32 %v586_v62, %v586_v62 }
 0x533   :  { %v588_v0 = vsel %vm82_vm4, %v587_v63, 0.0 }
 0x534   :  { %v589_v1 = vrot.slane %v588_v0, 4 }
 0x536   :  { %v590_v3 = vadd.f32 %v589_v1, %v588_v0 }
 0x538   :  { %v591_v4 = vrot.slane %v590_v3, 2 }
 0x53a   :  { %v592_v5 = vadd.f32 %v591_v4, %v590_v3 }
 0x53c   :  { %v593_v2 = vrot.slane %v592_v5, 1 }
 0x53e   :  { %v594_v7 = vadd.f32 %v593_v2, %v592_v5 }
 0x540   :  { %v595_v8 = vmul.f32 0.125, %v594_v7 }
 0x542   :  { %v596_v9 = vadd.f32 1e-05, %v595_v8 }
 0x544   :  { %1105 = vrsqrt.f32 %v596_v9 }
 0x54e   :  { %v1106_v15 = vpop.eup %1105 }
 0x54f   :  { %v598_v16 = vmul.f32 %v1106_v15, %v586_v62 }
 0x551   :  { %v603_v21 = vmul.f32 %v602_v14, %v598_v16 }
 0x553   :  { %v608_v22 = vadd.f32 %v607_v18, %v603_v21 }
 0x555   :  { %v609_v23 = vmax.f32 %v608_v22, 0.0 }
 0x557   :  { %977 = vmatmul.mubr.msk.f32.vlgmr.msra.gmra.mrb[4].mxu1 %vm82_vm4, %v609_v23 }
 0x62a   :  { %v692_v28 = vpop.f32.mrb[4].mxu1 }
 0x62b   :  { %v693_v29 = vadd.f32 %v692_v28, %v622_v27  ;;  %v978_v30 = vpop.f32.mrb[5].mxu1 }
 0x62d   :  { %v697_v31 = vmax.f32 %v693_v29, 0.0 }
 0x62f   :  { %v698_v32 = vsel %vm696_vm5, %v697_v31, %v693_v29 }
 0x630   :  { %996 = vmatmul.mubr.msk.f32.vlgmr.msra.gmra.mrb[6].mxu0 %vm82_vm4, %v698_v32 }
 0x703   :  { %v781_v35 = vpop.f32.mrb[6].mxu0 }
 0x704   :  { %v782_v36 = vadd.f32 %v781_v35, %v711_v34  ;;  %v997_v20 = vpop.f32.mrb[7].mxu0 }
 0x706   :  { %785 = vst.msk [vmem:[%s1326_s4] sm:$0xff] %vm82_vm4, %v782_v36 }
 0x707   :  { %790 = vsyncpa [#allocation3], 1 }
 0x708   :  { %791 = vsyncpa [#allocation5], 1 }

</bundles_post_ra>
